<compile_context>
chip_gen: v6e
topology: v6e:2x2x1
jax: 0.10.0
libtpu: 0.0.40
codegen_flags: <defaults>
</compile_context>

<pallas_src>
import functools

import numpy as np

import jax
import jax.numpy as jnp
from jax.experimental import pallas as pl
from jax.experimental.pallas import tpu as pltpu

GAMMA = 2.0
NUM_CLASSES = 8
LANE = 128
# Deterministic per-class weights from the module's __init__ (alpha=None branch).
CLASS_WEIGH = np.array(
    [1.0, 2.141256, 5.666667, 5.186441, 7.228346, 14.806452, 6.70511, 1.203145],
    dtype=np.float32,
)


def _sublane_multiple(dtype):
    """Second-minor tiling requirement per dtype: f32->8, bf16->16, int8/bool->32."""
    bits = jnp.dtype(dtype).itemsize * 8
    return max(8, 256 // bits)


def _focal_elements(x, t, class_weigh):
    """Plain-jnp per-element focal loss for the (small) tail / fallback path. x,t: (n, C)."""
    x = x.astype(jnp.float32)
    t = t.astype(jnp.float32)
    e = jnp.exp(-jnp.abs(x))
    bce = jnp.maximum(x, 0.0) - x * t + jnp.log1p(e)
    inv = 1.0 / (1.0 + e)
    probs = jnp.where(x >= 0.0, inv, e * inv)
    p_t = probs * t + (1.0 - probs) * (1.0 - t)
    fw = 1.0 - p_t
    return (fw * fw) * bce * class_weigh.reshape(1, -1)


def _focal_loss_kernel(x_ref, t_ref, acc_ref, *, class_weights, approx):
    # acc_ref is this core's (1, 8, 128) output block, resident across the "arbitrary" axis.
    @pl.when(pl.program_id(1) == 0)
    def _():
        acc_ref[...] = jnp.zeros_like(acc_ref)

    x = x_ref[...].astype(jnp.float32)  # packed logits  (tile_rows, 128)
    t = t_ref[...].astype(jnp.float32)  # packed targets (tile_rows, 128)

    # Bake the per-lane class weights from static values (lane l -> class l % C, matching the
    # row-major pack). iota + C selects on a single (1, 128) vreg: no weight input stream.
    c = len(class_weights)
    lane_cls = jax.lax.broadcasted_iota(jnp.int32, (1, LANE), 1) % c
    w = jnp.zeros((1, LANE), jnp.float32)
    for k, wk in enumerate(class_weights):
        w = jnp.where(lane_cls == k, jnp.float32(wk), w)

    # One EUP exp reused for both the stable BCE and the stable sigmoid.
    e = jnp.exp(-jnp.abs(x))
    bce = jnp.maximum(x, 0.0) - x * t + jnp.log1p(e)
    denom = 1.0 + e
    inv = pl.reciprocal(denom, approx=True) if approx else 1.0 / denom
    probs = jnp.where(x >= 0.0, inv, e * inv)  # numerically-stable sigmoid(x)

    p_t = probs * t + (1.0 - probs) * (1.0 - t)
    fw = 1.0 - p_t
    focal = (fw * fw) * bce * w  # gamma=2 -> explicit square (VPU, not pow)

    # Cross-vreg (VALU-only) reduce into a full (8,128) vreg; lane/sublane reduce deferred.
    acc_ref[...] += focal.reshape(-1, 8, LANE).sum(axis=0, keepdims=True)


def focal_loss(inputs, targets, class_weigh=CLASS_WEIGH, max_tile_rows=8192,
               approx_reciprocal=False):
    """inputs, targets: (B, num_classes). Returns scalar mean focal loss (float32).

    class_weigh must be a static (non-traced) array; it is baked into the kernel.
    """
    B, C = inputs.shape
    assert targets.shape == (B, C)
    assert LANE % C == 0, "class count must divide 128 for the lane-dense repack"
    total = B * C
    samples_per_row = LANE // C

    cw_np = np.asarray(class_weigh, np.float32)
    cw = jnp.asarray(cw_np)

    mult = max(_sublane_multiple(inputs.dtype), _sublane_multiple(targets.dtype))
    rows = total // LANE                                  # complete 128-lane packed rows
    tile_rows = min(int(max_tile_rows) // mult * mult, (rows // mult) * mult)

    total_sum = jnp.float32(0.0)
    main_samples = 0

    if tile_rows >= mult:                                 # Pallas kernel engages
        n_tiles = rows // tile_rows
        num_cores = 2 if n_tiles >= 2 else 1              # v7x: both TCs; sequential elsewhere
        tiles_per_core = n_tiles // num_cores
        used_rows = tiles_per_core * num_cores * tile_rows
        main_samples = used_rows * samples_per_row

        aligned_samples = rows * samples_per_row
        if aligned_samples == B:
            # Copy-free view: reshape the whole array; the grid only touches used_rows rows.
            x2 = inputs.reshape(rows, LANE)
            t2 = targets.reshape(rows, LANE)
        else:
            # Lane-misaligned batch: slice the aligned sample prefix (reads/writes prefix once).
            x2 = inputs[:aligned_samples].reshape(rows, LANE)
            t2 = targets[:aligned_samples].reshape(rows, LANE)

        itm = jnp.dtype(inputs.dtype).itemsize + jnp.dtype(targets.dtype).itemsize
        vmem_limit = max(32 * 1024 * 1024, 2 * tile_rows * LANE * itm + (1 << 20))

        kernel = functools.partial(
            _focal_loss_kernel,
            class_weights=tuple(float(v) for v in cw_np),
            approx=bool(approx_reciprocal),
        )

        acc = pl.pallas_call(
            kernel,
            out_shape=jax.ShapeDtypeStruct((num_cores, 8, LANE), jnp.float32),
            grid_spec=pltpu.PrefetchScalarGridSpec(
                num_scalar_prefetch=0,
                grid=(num_cores, tiles_per_core),
                in_specs=[
                    pl.BlockSpec((tile_rows, LANE),
                                 lambda c, i: (c * tiles_per_core + i, 0)),
                    pl.BlockSpec((tile_rows, LANE),
                                 lambda c, i: (c * tiles_per_core + i, 0)),
                ],
                out_specs=pl.BlockSpec((1, 8, LANE), lambda c, i: (c, 0, 0)),
            ),
            compiler_params=pltpu.CompilerParams(
                dimension_semantics=("parallel", "arbitrary"),
                vmem_limit_bytes=int(vmem_limit),
            ),
        )(x2, t2)

        total_sum = jnp.sum(acc)                          # single cross-lane/sublane reduce

    if main_samples < B:
        # Sample-aligned tail (< one tile worth of data): plain jnp, reads only the tail.
        tail = _focal_elements(inputs[main_samples:], targets[main_samples:], cw)
        total_sum = total_sum + jnp.sum(tail)

    # Mean with the TRUE element count.
    return total_sum / total


def _focal_loss_ref(inputs, targets, class_weigh=CLASS_WEIGH):
    cw = jnp.asarray(np.asarray(class_weigh, np.float32))
    return jnp.mean(_focal_elements(inputs, targets, cw))


if __name__ == "__main__":
    key = jax.random.PRNGKey(0)
    k1, k2 = jax.random.split(key)
    # B = 272 = 17 lane-rows of 16 samples: exercises the copy-free reshape fast path, one
    # full kernel tile (16 rows with bf16 targets -> sublane multiple 16) and the jnp tail.
    B = 272
    logits = jax.random.normal(k1, (B, NUM_CLASSES), dtype=jnp.float32) * 2.0
    # Targets are exactly {0,1}: feed them as bf16 to halve that HBM stream (kernel casts).
    targets = (jax.random.uniform(k2, (B, NUM_CLASSES)) > 0.5).astype(jnp.bfloat16)

    out = focal_loss(logits, targets)
    jax.block_until_ready(out)

    ref = _focal_loss_ref(logits, targets)
    assert jnp.allclose(out, ref, rtol=1e-5, atol=1e-6), (out, ref)
    print("KERNEL_OK")
</pallas_src>

<mosaic_0001>
module attributes {stable_mosaic.version = 11 : i64} {
  func.func @_focal_loss_kernel(%arg0: i32, %arg1: i32, %arg2: memref<16x128xf32, #tpu.memory_space<vmem>>, %arg3: memref<16x128xbf16, #tpu.memory_space<vmem>>, %arg4: memref<1x8x128xf32, #tpu.memory_space<vmem>>) attributes {dimension_semantics = [#tpu.dimension_semantics<parallel>, #tpu.dimension_semantics<arbitrary>], iteration_bounds = array<i64: 1, 1>, scalar_prefetch = 0 : i64, scratch_operands = 0 : i64, tpu.core_type = #tpu.core_type<tc>, window_params = [{transform_indices = @transform_0, window_bounds = array<i64: 16, 128>}, {transform_indices = @transform_1, window_bounds = array<i64: 16, 128>}, {transform_indices = @transform_2, window_bounds = array<i64: 1, 8, 128>}]} {
    %c0_i32 = arith.constant 0 : i32
    %0 = arith.cmpi eq, %arg1, %c0_i32 : i32
    %1 = arith.extui %0 : i1 to i32
    %c0_i32_0 = arith.constant 0 : i32
    %2 = arith.cmpi ne, %1, %c0_i32_0 : i32
    scf.if %2 {
      %cst_33 = arith.constant 0.000000e+00 : f32
      %93 = vector.broadcast %cst_33 : f32 to vector<1x8x128xf32>
      %c0_34 = arith.constant 0 : index
      %c0_35 = arith.constant 0 : index
      %c0_36 = arith.constant 0 : index
      %94 = vector.load %arg4[%c0_34, %c0_35, %c0_36] : memref<1x8x128xf32, #tpu.memory_space<vmem>>, vector<1x8x128xf32>
      tpu.vector_store %arg4[%c0_34, %c0_35, %c0_36], %93 {strides = array<i32>} : memref<1x8x128xf32, #tpu.memory_space<vmem>>, vector<1x8x128xf32>,
    } else {
    }
    %c0 = arith.constant 0 : index
    %c0_1 = arith.constant 0 : index
    %3 = vector.load %arg2[%c0, %c0_1] : memref<16x128xf32, #tpu.memory_space<vmem>>, vector<16x128xf32>
    %c0_2 = arith.constant 0 : index
    %c0_3 = arith.constant 0 : index
    %4 = vector.load %arg3[%c0_2, %c0_3] : memref<16x128xbf16, #tpu.memory_space<vmem>>, vector<16x128xbf16>
    %5 = arith.extf %4 : vector<16x128xbf16> to vector<16x128xf32>
    %6 = tpu.iota {dimensions = array<i32: 1>} : vector<1x128xi32>
    %c8_i32 = arith.constant 8 : i32
    %c0_i32_4 = arith.constant 0 : i32
    %7 = arith.cmpi eq, %c8_i32, %c0_i32_4 : i32
    %c1_i32 = arith.constant 1 : i32
    %8 = arith.select %7, %c1_i32, %c8_i32 : i32
    %9 = vector.broadcast %8 : i32 to vector<1x128xi32>
    %10 = arith.remsi %6, %9 : vector<1x128xi32>
    %c0_i32_5 = arith.constant 0 : i32
    %11 = vector.broadcast %c0_i32_5 : i32 to vector<1x128xi32>
    %12 = arith.cmpi ne, %10, %11 : vector<1x128xi32>
    %c0_i32_6 = arith.constant 0 : i32
    %13 = vector.broadcast %c0_i32_6 : i32 to vector<1x128xi32>
    %14 = arith.cmpi slt, %10, %13 : vector<1x128xi32>
    %c0_i32_7 = arith.constant 0 : i32
    %15 = arith.cmpi slt, %8, %c0_i32_7 : i32
    %16 = vector.broadcast %15 : i1 to vector<1x128xi1>
    %17 = vector.broadcast %16 : vector<1x128xi1> to vector<1x128xi1>
    %18 = arith.xori %14, %17 : vector<1x128xi1>
    %19 = arith.andi %18, %12 : vector<1x128xi1>
    %20 = vector.broadcast %8 : i32 to vector<1x128xi32>
    %21 = arith.addi %10, %20 : vector<1x128xi32>
    %22 = arith.select %19, %21, %10 : vector<1x128xi1>, vector<1x128xi32>
    %cst = arith.constant 0.000000e+00 : f32
    %23 = vector.broadcast %cst : f32 to vector<1x128xf32>
    %c0_i32_8 = arith.constant 0 : i32
    %24 = vector.broadcast %c0_i32_8 : i32 to vector<1x128xi32>
    %25 = arith.cmpi eq, %22, %24 : vector<1x128xi32>
    %cst_9 = arith.constant 1.000000e+00 : f32
    %26 = vector.broadcast %cst_9 : f32 to vector<1x128xf32>
    %27 = arith.select %25, %26, %23 : vector<1x128xi1>, vector<1x128xf32>
    %c1_i32_10 = arith.constant 1 : i32
    %28 = vector.broadcast %c1_i32_10 : i32 to vector<1x128xi32>
    %29 = arith.cmpi eq, %22, %28 : vector<1x128xi32>
    %cst_11 = arith.constant 2.14125609 : f32
    %30 = vector.broadcast %cst_11 : f32 to vector<1x128xf32>
    %31 = arith.select %29, %30, %27 : vector<1x128xi1>, vector<1x128xf32>
    %c2_i32 = arith.constant 2 : i32
    %32 = vector.broadcast %c2_i32 : i32 to vector<1x128xi32>
    %33 = arith.cmpi eq, %22, %32 : vector<1x128xi32>
    %cst_12 = arith.constant 5.66666698 : f32
    %34 = vector.broadcast %cst_12 : f32 to vector<1x128xf32>
    %35 = arith.select %33, %34, %31 : vector<1x128xi1>, vector<1x128xf32>
    %c3_i32 = arith.constant 3 : i32
    %36 = vector.broadcast %c3_i32 : i32 to vector<1x128xi32>
    %37 = arith.cmpi eq, %22, %36 : vector<1x128xi32>
    %cst_13 = arith.constant 5.18644094 : f32
    %38 = vector.broadcast %cst_13 : f32 to vector<1x128xf32>
    %39 = arith.select %37, %38, %35 : vector<1x128xi1>, vector<1x128xf32>
    %c4_i32 = arith.constant 4 : i32
    %40 = vector.broadcast %c4_i32 : i32 to vector<1x128xi32>
    %41 = arith.cmpi eq, %22, %40 : vector<1x128xi32>
    %cst_14 = arith.constant 7.22834587 : f32
    %42 = vector.broadcast %cst_14 : f32 to vector<1x128xf32>
    %43 = arith.select %41, %42, %39 : vector<1x128xi1>, vector<1x128xf32>
    %c5_i32 = arith.constant 5 : i32
    %44 = vector.broadcast %c5_i32 : i32 to vector<1x128xi32>
    %45 = arith.cmpi eq, %22, %44 : vector<1x128xi32>
    %cst_15 = arith.constant 14.8064518 : f32
    %46 = vector.broadcast %cst_15 : f32 to vector<1x128xf32>
    %47 = arith.select %45, %46, %43 : vector<1x128xi1>, vector<1x128xf32>
    %c6_i32 = arith.constant 6 : i32
    %48 = vector.broadcast %c6_i32 : i32 to vector<1x128xi32>
    %49 = arith.cmpi eq, %22, %48 : vector<1x128xi32>
    %cst_16 = arith.constant 6.705110e+00 : f32
    %50 = vector.broadcast %cst_16 : f32 to vector<1x128xf32>
    %51 = arith.select %49, %50, %47 : vector<1x128xi1>, vector<1x128xf32>
    %c7_i32 = arith.constant 7 : i32
    %52 = vector.broadcast %c7_i32 : i32 to vector<1x128xi32>
    %53 = arith.cmpi eq, %22, %52 : vector<1x128xi32>
    %cst_17 = arith.constant 1.20314503 : f32
    %54 = vector.broadcast %cst_17 : f32 to vector<1x128xf32>
    %55 = arith.select %53, %54, %51 : vector<1x128xi1>, vector<1x128xf32>
    %56 = math.absf %3 : vector<16x128xf32>
    %cst_18 = arith.constant 0.000000e+00 : f32
    %57 = vector.broadcast %cst_18 : f32 to vector<16x128xf32>
    %58 = arith.subf %57, %56 : vector<16x128xf32>
    %59 = math.exp %58 : vector<16x128xf32>
    %cst_19 = arith.constant 0.000000e+00 : f32
    %60 = vector.broadcast %cst_19 : f32 to vector<16x128xf32>
    %61 = arith.maximumf %3, %60 : vector<16x128xf32>
    %62 = arith.mulf %3, %5 : vector<16x128xf32>
    %63 = arith.subf %61, %62 : vector<16x128xf32>
    %64 = math.log1p %59 : vector<16x128xf32>
    %65 = arith.addf %63, %64 : vector<16x128xf32>
    %cst_20 = arith.constant 1.000000e+00 : f32
    %66 = vector.broadcast %cst_20 : f32 to vector<16x128xf32>
    %67 = arith.addf %66, %59 : vector<16x128xf32>
    %cst_21 = arith.constant 1.000000e+00 : f32
    %68 = vector.broadcast %cst_21 : f32 to vector<16x128xf32>
    %69 = arith.divf %68, %67 : vector<16x128xf32>
    %cst_22 = arith.constant 0.000000e+00 : f32
    %70 = vector.broadcast %cst_22 : f32 to vector<16x128xf32>
    %71 = arith.cmpf oge, %3, %70 : vector<16x128xf32>
    %72 = arith.mulf %59, %69 : vector<16x128xf32>
    %73 = arith.select %71, %69, %72 : vector<16x128xi1>, vector<16x128xf32>
    %74 = arith.mulf %73, %5 : vector<16x128xf32>
    %cst_23 = arith.constant 1.000000e+00 : f32
    %75 = vector.broadcast %cst_23 : f32 to vector<16x128xf32>
    %76 = arith.subf %75, %73 : vector<16x128xf32>
    %cst_24 = arith.constant 1.000000e+00 : f32
    %77 = vector.broadcast %cst_24 : f32 to vector<16x128xf32>
    %78 = arith.subf %77, %5 : vector<16x128xf32>
    %79 = arith.mulf %76, %78 : vector<16x128xf32>
    %80 = arith.addf %74, %79 : vector<16x128xf32>
    %cst_25 = arith.constant 1.000000e+00 : f32
    %81 = vector.broadcast %cst_25 : f32 to vector<16x128xf32>
    %82 = arith.subf %81, %80 : vector<16x128xf32>
    %83 = arith.mulf %82, %82 : vector<16x128xf32>
    %84 = arith.mulf %83, %65 : vector<16x128xf32>
    %85 = vector.broadcast %55 : vector<1x128xf32> to vector<16x128xf32>
    %86 = arith.mulf %84, %85 : vector<16x128xf32>
    %c0_26 = arith.constant 0 : index
    %c0_27 = arith.constant 0 : index
    %c0_28 = arith.constant 0 : index
    %87 = vector.load %arg4[%c0_26, %c0_27, %c0_28] : memref<1x8x128xf32, #tpu.memory_space<vmem>>, vector<1x8x128xf32>
    %88 = vector.shape_cast %86 : vector<16x128xf32> to vector<2x8x128xf32>
    %cst_29 = arith.constant dense<0.000000e+00> : vector<8x128xf32>
    %89 = vector.multi_reduction <add>, %88, %cst_29 [0] : vector<2x8x128xf32> to vector<8x128xf32>
    %90 = vector.shape_cast %89 : vector<8x128xf32> to vector<1x8x128xf32>
    %91 = arith.addf %87, %90 : vector<1x8x128xf32>
    %c0_30 = arith.constant 0 : index
    %c0_31 = arith.constant 0 : index
    %c0_32 = arith.constant 0 : index
    %92 = vector.load %arg4[%c0_30, %c0_31, %c0_32] : memref<1x8x128xf32, #tpu.memory_space<vmem>>, vector<1x8x128xf32>
    tpu.vector_store %arg4[%c0_30, %c0_31, %c0_32], %91 {strides = array<i32>} : memref<1x8x128xf32, #tpu.memory_space<vmem>>, vector<1x8x128xf32>,
    return
  }
  func.func @transform_0(%arg0: i32, %arg1: i32) -> (i32, i32) {
    %c1_i32 = arith.constant 1 : i32
    %0 = arith.muli %arg0, %c1_i32 : i32
    %1 = arith.addi %0, %arg1 : i32
    %c0_i32 = arith.constant 0 : i32
    %c0_i32_0 = arith.constant 0 : i32
    return %1, %c0_i32 : i32, i32
  }
  func.func @transform_1(%arg0: i32, %arg1: i32) -> (i32, i32) {
    %c1_i32 = arith.constant 1 : i32
    %0 = arith.muli %arg0, %c1_i32 : i32
    %1 = arith.addi %0, %arg1 : i32
    %c0_i32 = arith.constant 0 : i32
    %c0_i32_0 = arith.constant 0 : i32
    return %1, %c0_i32 : i32, i32
  }
  func.func @transform_2(%arg0: i32, %arg1: i32) -> (i32, i32, i32) {
    %c0_i32 = arith.constant 0 : i32
    %c0_i32_0 = arith.constant 0 : i32
    %c0_i32_1 = arith.constant 0 : i32
    return %arg0, %c0_i32, %c0_i32_0 : i32, i32, i32
  }
}

</mosaic_0001>

<bundles_post_ra>
// kernel: tpu_custom_call.1
= control target key start
LH: loop header
LB: loop body
LE: loop exit
PB: predicated region body
PF: predicated region fallthrough
CT: control target
= control target key end

     0   :  { %7 = vsyncpa [#allocation3], 0  ;;  %s355_s0 = inlined_call_operand.hbm [shape: f32[17,128], index: 0, kind: input, shape index: {}]   ;;  %s356_s1 = inlined_call_operand.hbm [shape: bf16[17,128], index: 1, kind: input, shape index: {}]   ;;  %s357_s2 = inlined_call_operand.hbm [shape: f32[1,8,128], index: 2, kind: output, shape index: {}]  }
   0x1   :  { %8 = vsyncpa [#allocation6], 0 }
   0x2   :  { %9 = vsyncpa [#allocation4], 0  ;;  %s287_s9 = smov [#allocation2]  }
   0x3   :  { %s25_s10 = sshll.u32 %s287_s9, 4  ;;  %s26_s10 = int_to_ptr.vmem [resolvable:$true] %s25_s10 }
   0x4   :  { %s229_s11 = scalar_lea.vmem %s26_s10, 256  ;;  %p234_p1 = scmp.lt.s32.totalorder %s26_s10, %s26_s10 }
   0x5   :  { %p230_p0 = scmp.ne.s32.totalorder %s26_s10, %s229_s11  ;;  %p235_p2 = scmp.lt.s32.totalorder %s229_s11, %s229_s11 }
   0x7   :  { %p236_p3 = por %p235_p2, %p234_p1 }
   0x9   :  { %p237_p4 = pnand %p236_p3, %p230_p0 }
   0xb   :  { %240 = shalt.err (!%p237_p4)
}
   0xc   :  { %s288_s12 = smov 128   ;;  %s289_s13 = smov 8  }
   0xd   :  { %31 = dma.hbm_to_vmem [thread:$0]  %s355_s0, 256, %s26_s10, [#allocation3], %s288_s12, %s288_s12, %s289_s13  }
   0xe   :  { %s290_s16 = smov [#allocation5]  }
   0xf   :  { %s47_s17 = sshll.u32 %s290_s16, 4  ;;  %s48_s17 = int_to_ptr.vmem [resolvable:$true] %s47_s17 }
  0x10   :  { %s249_s18 = scalar_lea.vmem %s48_s17, 128  ;;  %p254_p6 = scmp.lt.s32.totalorder %s48_s17, %s48_s17 }
  0x11   :  { %p250_p5 = scmp.ne.s32.totalorder %s48_s17, %s249_s18  ;;  %p255_p7 = scmp.lt.s32.totalorder %s249_s18, %s249_s18 }
  0x13   :  { %p256_p8 = por %p255_p7, %p254_p6 }
  0x15   :  { %p257_p9 = pnand %p256_p8, %p250_p5 }
  0x17   :  { %260 = shalt.err (!%p257_p9)
}
  0x18   :  { %s291_s19 = smov 64   ;;  %s292_s20 = smov 4  }
  0x19   :  { %53 = dma.hbm_to_vmem [thread:$0]  %s356_s1, 128, %s48_s17, [#allocation6], %s291_s19, %s291_s19, %s292_s20  }
  0x1a   :  { %281 = dma.done.wait [#allocation3], 256  }
  0x1b   :  { %282 = vsyncadd [#allocation3], 4294967040 }
  0x1c   :  { %283 = dma.done.wait [#allocation6], 128  }
  0x1d   :  { %284 = vsyncadd [#allocation6], 4294967168  ;;  %v316_v0 = vld [vmem:[#allocation2] sm:$0xff]  ;;  %v318_v1 = vld [vmem:[#allocation2 + $0x8] sm:$0xff]  ;;  %v83_v8 = vlaneseq  ;;  %v293_v15 = vmov 0.0   ;;  %s294_s0 = smov [#allocation7]  }
  0x1e   :  { %v113_v2 = vand.u32 2147483647, %v316_v0  ;;  %v114_v3 = vand.u32 2147483647, %v318_v1  ;;  %v198_v19 = vld [vmem:[#allocation5] sm:$0xff]   ;;  %v121_v28 = vmax.f32 %v316_v0, 0.0 }
  0x1f   :  { %v84_v9 = vand.u32 127, %v83_v8  ;;  %v199_v24 = vunpack.c.l.bf16 %v198_v19  ;;  %v200_v25 = vunpack.c.h.bf16 %v198_v19  ;;  %v122_v33 = vmax.f32 %v318_v1, 0.0  ;;  %s187_s1 = sshll.u32 %s294_s0, 4  ;;  %s188_s1 = int_to_ptr.vmem [resolvable:$true] %s187_s1 }
  0x20   :  { %v115_v4 = vsub.f32 0.0, %v113_v2  ;;  %v116_v5 = vsub.f32 0.0, %v114_v3  ;;  %vm153_vm6 = vcmp.ge.f32.partialorder %v316_v0, 0.0  ;;  %vm154_vm7 = vcmp.ge.f32.partialorder %v318_v1, 0.0  ;;  %s261_s23 = scalar_lea.vmem %s188_s1, 128  ;;  %p266_p11 = scmp.lt.s32.totalorder %s188_s1, %s188_s1 }
  0x21   :  { %v322_v10 = vand.u32 7, %v84_v9  ;;  %v123_v34 = vmul.f32 %v199_v24, %v316_v0  ;;  %v124_v36 = vmul.f32 %v200_v25, %v318_v1  ;;  %v163_v41 = vsub.f32 1.0, %v199_v24  ;;  %p262_p10 = scmp.ne.s32.totalorder %s188_s1, %s261_s23  ;;  %p267_p12 = scmp.lt.s32.totalorder %s261_s23, %s261_s23 }
  0x22   :  { %v117_v6 = vmul.f32 1.442695, %v115_v4  ;;  %v119_v7 = vmul.f32 1.442695, %v116_v5  ;;  %v164_v42 = vsub.f32 1.0, %v200_v25 }
  0x23   :  { %vm97_vm0 = vcmp.eq.s32.totalorder %v322_v10, 0  ;;  %vm99_vm1 = vcmp.eq.s32.totalorder %v322_v10, 1  ;;  %vm101_vm2 = vcmp.eq.s32.totalorder %v322_v10, 2  ;;  %vm103_vm3 = vcmp.eq.s32.totalorder %v322_v10, 3  ;;  %p268_p13 = por %p267_p12, %p266_p11 }
  0x24   :  { %209 = vpow2.f32 %v117_v6  ;;  %v98_v16 = vsel %vm97_vm0, 1.0, %v293_v15  ;;  %vm105_vm4 = vcmp.eq.s32.totalorder %v322_v10, 4  ;;  %vm107_vm5 = vcmp.eq.s32.totalorder %v322_v10, 5 }
  0x25   :  { %211 = vpow2.f32 %v119_v7  ;;  %v100_v17 = vsel %vm99_vm1, 2.141256, %v98_v16  ;;  %vm109_vm10 = vcmp.eq.s32.totalorder %v322_v10, 6  ;;  %v125_v54 = vsub.f32 %v121_v28, %v123_v34  ;;  %p269_p0 = pnand %p268_p13, %p262_p10 }
  0x26   :  { %v102_v18 = vsel %vm101_vm2, 5.666667, %v100_v17  ;;  %v126_v57 = vsub.f32 %v122_v33, %v124_v36  ;;  %vm111_vm11 = vcmp.eq.s32.totalorder %v322_v10, 7 }
  0x27   :  { %v104_v22 = vsel %vm103_vm3, 5.186441, %v102_v18 }
  0x28   :  { %v106_v32 = vsel %vm105_vm4, 7.228346, %v104_v22 }
  0x29   :  { %v108_v56 = vsel %vm107_vm5, 14.806452, %v106_v32 }
  0x2a   :  { %v110_v63 = vsel %vm109_vm10, 6.70511, %v108_v56 }
  0x2b   :  { %v112_v5 = vsel %vm111_vm11, 1.203145, %v110_v63 }
  0x31   :  { %v210_v11 = vpop.eup %209 }
  0x32   :  { %v212_v12 = vpop.eup %211  ;;  %v127_v13 = vadd.f32 1.0, %v210_v11  ;;  %v130_v20 = vmul.f32 -0.5, %v210_v11  ;;  %v133_v26 = vand.u32 2147483647, %v210_v11 }
  0x33   :  { %v136_v14 = vadd.f32 1.0, %v212_v12  ;;  %v139_v21 = vmul.f32 -0.5, %v212_v12  ;;  %v142_v37 = vand.u32 2147483647, %v212_v12 }
  0x34   :  { %213 = vlog2.f32 %v127_v13  ;;  %v131_v29 = vadd.f32 1.0, %v130_v20  ;;  %vm336_vm8 = vcmp.lt.f32.partialorder %v133_v26, 0.0004427343 }
  0x35   :  { %215 = vlog2.f32 %v136_v14  ;;  %v140_v30 = vadd.f32 1.0, %v139_v21  ;;  %vm340_vm9 = vcmp.lt.f32.partialorder %v142_v37, 0.0004427343 }
  0x36   :  { %217 = vrcp.f32 %v127_v13  ;;  %v132_v44 = vmul.f32 %v210_v11, %v131_v29 }
  0x37   :  { %219 = vrcp.f32 %v136_v14  ;;  %v141_v45 = vmul.f32 %v212_v12, %v140_v30 }
  0x41   :  { %v214_v23 = vpop.eup %213 }
  0x42   :  { %v216_v27 = vpop.eup %215  ;;  %v129_v43 = vmul.f32 0.6931472, %v214_v23 }
  0x43   :  { %v218_v31 = vpop.eup %217  ;;  %v138_v47 = vmul.f32 0.6931472, %v216_v27 }
  0x44   :  { %v220_v35 = vpop.eup %219  ;;  %v155_v38 = vmul.f32 %v218_v31, %v210_v11  ;;  %v135_v58 = vsel %vm336_vm8, %v132_v44, %v129_v43 }
  0x45   :  { %v156_v40 = vmul.f32 %v220_v35, %v212_v12  ;;  %v144_v60 = vsel %vm340_vm9, %v141_v45, %v138_v47  ;;  %v145_v0 = vadd.f32 %v135_v58, %v125_v54 }
  0x46   :  { %v157_v46 = vsel %vm153_vm6, %v218_v31, %v155_v38  ;;  %v146_v2 = vadd.f32 %v144_v60, %v126_v57 }
  0x47   :  { %v158_v48 = vsel %vm154_vm7, %v220_v35, %v156_v40  ;;  %v159_v49 = vmul.f32 %v199_v24, %v157_v46  ;;  %v161_v50 = vsub.f32 1.0, %v157_v46 }
  0x48   :  { %v160_v52 = vmul.f32 %v200_v25, %v158_v48  ;;  %v162_v53 = vsub.f32 1.0, %v158_v48 }
  0x49   :  { %v165_v55 = vmul.f32 %v163_v41, %v161_v50 }
  0x4a   :  { %v166_v59 = vmul.f32 %v164_v42, %v162_v53 }
  0x4b   :  { %v167_v61 = vadd.f32 %v165_v55, %v159_v49 }
  0x4c   :  { %v168_v62 = vadd.f32 %v166_v59, %v160_v52 }
  0x4d   :  { %v169_v1 = vsub.f32 1.0, %v167_v61 }
  0x4e   :  { %v170_v3 = vsub.f32 1.0, %v168_v62 }
  0x4f   :  { %v171_v4 = vmul.f32 %v169_v1, %v169_v1 }
  0x50   :  { %v172_v6 = vmul.f32 %v170_v3, %v170_v3 }
  0x51   :  { %v173_v7 = vmul.f32 %v171_v4, %v145_v0 }
  0x52   :  { %v174_v8 = vmul.f32 %v172_v6, %v146_v2 }
  0x53   :  { %v175_v9 = vmul.f32 %v173_v7, %v112_v5 }
  0x54   :  { %v176_v11 = vmul.f32 %v174_v8, %v112_v5 }
  0x56   :  { %v178_v12 = vadd.f32 %v176_v11, %v175_v9 }
  0x58   :  { %180 = vst [vmem:[#allocation7] sm:$0xff] %v178_v12 }
  0x59   :  { %272 = shalt.err (!%p269_p0)
}
  0x5a   :  { %190 = dma.vmem_to_hbm [thread:$0]  %s188_s1, 128, %s357_s2, [#allocation4]  }
  0x5b   :  { %285 = dma.done.wait [#allocation4], 128  }
  0x5c   :  { %286 = vsyncadd [#allocation4], 4294967168 }
  0x5d   :  { %194 = vsyncpa [#allocation3], 1 }
  0x5e   :  { %195 = vsyncpa [#allocation6], 1 }
  0x5f   :  { %196 = vsyncpa [#allocation4], 1 }

</bundles_post_ra>
